<compile_context>
chip_gen: v6e
topology: v6e:2x2x1
jax: 0.10.0
libtpu: 0.0.40
codegen_flags: <defaults>
</compile_context>

<pallas_src>
import jax
import jax.numpy as jnp
from jax.experimental import pallas as pl
from jax.experimental.pallas import tpu as pltpu

INPUT_SIZE = 500
HIDDEN_NODES = 100
HIDDEN_LAYERS = 3
HID_PAD = 128          # hidden width padded to a lane multiple
BATCH = 8              # small demo batch


def mlp_kernel(x_ref, w_in_ref, w_h_ref, b_h_ref, w_out_ref, b_out_ref, o_ref):
    # Input layer: cast the raw f32 tile to bf16 at the MXU boundary; bf16 x bf16
    # matmul with f32 accumulation, then f32 bias + ReLU on the VPU.
    xb = x_ref[...].astype(jnp.bfloat16)                        # (tile_b, 500)
    h = jnp.dot(xb, w_in_ref[...], preferred_element_type=jnp.float32)
    h = jnp.maximum(h + b_h_ref[0:1, :], 0.0)                   # (tile_b, 128) f32

    # Hidden layers (+ ReLU); activations re-cast to bf16 only for the MXU.
    for l in range(HIDDEN_LAYERS):
        h = jnp.dot(h.astype(jnp.bfloat16), w_h_ref[l],
                    preferred_element_type=jnp.float32)
        h = jnp.maximum(h + b_h_ref[l + 1:l + 2, :], 0.0)

    # Output layer (out_features=1): (1,128) @ (128,tile_b) f32 dot against h.T.
    # The MXU is idle at this point, and the result lands lane-major (batch on
    # lanes), so the store is a single (1, tile_b) row, not a replicated block.
    o = jnp.dot(w_out_ref[...], h.T, preferred_element_type=jnp.float32)
    o_ref[0] = (o + b_out_ref[0]).astype(o_ref.dtype)           # (1, tile_b)


def _choose_tile_rows(batch):
    """Rows per grid step."""
    rows8 = -(-batch // 8) * 8
    if rows8 <= 128:
        return rows8            # small batch: one step, no artificial splitting
    kind = ""
    try:
        kind = jax.devices()[0].device_kind.lower()
    except Exception:
        pass
    # v6e (1 TC): 256 rows fill an MXU pass & amortize per-step overhead.
    # v5e: 128 keeps f32 activation vreg pressure low (single vst slot).
    # v7x (2 TCs): 128 guarantees >=2 parallel grid steps once B >= 256.
    return 256 if "v6" in kind else 128


def mlp_forward(x, params):
    """x: (B, INPUT_SIZE) f32. params: packed params from pack_params()."""
    B, F = x.shape
    assert F == INPUT_SIZE

    tile_b = _choose_tile_rows(B)
    B_pad = -(-B // tile_b) * tile_b
    if B_pad != B:              # pad batch rows only when required (zero rows)
        x = jnp.pad(x, ((0, B_pad - B), (0, 0)))
    num_tiles = B_pad // tile_b

    grid_spec = pltpu.PrefetchScalarGridSpec(
        num_scalar_prefetch=0,
        grid=(num_tiles,),
        in_specs=[
            pl.BlockSpec((tile_b, INPUT_SIZE), lambda i: (i, 0)),          # x tile
            pl.BlockSpec((INPUT_SIZE, HID_PAD), lambda i: (0, 0)),         # w_in
            pl.BlockSpec((HIDDEN_LAYERS, HID_PAD, HID_PAD),
                         lambda i: (0, 0, 0)),                             # hidden Ws
            pl.BlockSpec((1 + HIDDEN_LAYERS, HID_PAD), lambda i: (0, 0)),  # biases
            pl.BlockSpec((1, HID_PAD), lambda i: (0, 0)),                  # w_out row
            pl.BlockSpec(memory_space=pltpu.MemorySpace.SMEM),             # b_out
        ],
        out_specs=pl.BlockSpec((1, 1, tile_b), lambda i: (i, 0, 0)),       # lane-major
    )

    out = pl.pallas_call(
        mlp_kernel,
        out_shape=jax.ShapeDtypeStruct((num_tiles, 1, tile_b), jnp.float32),
        grid_spec=grid_spec,
        compiler_params=pltpu.CompilerParams(
            dimension_semantics=("parallel",)),
    )(x, params["w_in"], params["w_h"], params["b_h"],
      params["w_out"], params["b_out"])

    # (num_tiles, 1, tile_b) rows are in batch order -> (B, 1).
    return out.reshape(B_pad, 1)[:B]


def init_params(key):
    """PyTorch nn.Linear-style init: U(-1/sqrt(fan_in), 1/sqrt(fan_in)).
    Raw f32 params with the true (unpadded) shapes; weights stored (in, out)."""
    def linear(k, fan_in, fan_out):
        kw, kb = jax.random.split(k)
        bound = 1.0 / jnp.sqrt(fan_in)
        w = jax.random.uniform(kw, (fan_in, fan_out), jnp.float32, -bound, bound)
        b = jax.random.uniform(kb, (fan_out,), jnp.float32, -bound, bound)
        return w, b

    keys = jax.random.split(key, 5)
    raw = {}
    raw["w_in"], raw["b_in"] = linear(keys[0], INPUT_SIZE, HIDDEN_NODES)
    for i in range(HIDDEN_LAYERS):
        raw[f"wh{i}"], raw[f"bh{i}"] = linear(keys[1 + i], HIDDEN_NODES, HIDDEN_NODES)
    raw["w_out"], raw["b_out"] = linear(keys[4], HIDDEN_NODES, 1)
    return raw


def pack_params(raw):
    """Zero-pad hidden dims (100 -> 128 lanes) and pack kernel operands:
       w_in (500,128) bf16, w_h (3,128,128) bf16, b_h (4,128) f32,
       w_out (1,128) f32, b_out (1,) f32 (SMEM scalar)."""
    def pad_w(w):
        return jnp.pad(w, ((0, HID_PAD - w.shape[0]), (0, HID_PAD - w.shape[1])))

    def pad_b(b):
        return jnp.pad(b, ((0, HID_PAD - b.shape[0]),))

    p = {}
    p["w_in"] = jnp.pad(raw["w_in"], ((0, 0), (0, HID_PAD - HIDDEN_NODES))
                        ).astype(jnp.bfloat16)
    p["w_h"] = jnp.stack([pad_w(raw[f"wh{i}"]) for i in range(HIDDEN_LAYERS)]
                         ).astype(jnp.bfloat16)
    p["b_h"] = jnp.stack([pad_b(raw["b_in"])]
                         + [pad_b(raw[f"bh{i}"]) for i in range(HIDDEN_LAYERS)]
                         ).astype(jnp.float32)
    p["w_out"] = pad_b(raw["w_out"][:, 0]).reshape(1, HID_PAD).astype(jnp.float32)
    p["b_out"] = raw["b_out"].astype(jnp.float32)          # shape (1,)
    return p


def mlp_reference_f32(x, raw):
    """Pure f32 reference = exact semantics of the PyTorch module."""
    hp = jax.lax.Precision.HIGHEST
    h = jnp.maximum(jnp.dot(x, raw["w_in"], precision=hp) + raw["b_in"], 0.0)
    for i in range(HIDDEN_LAYERS):
        h = jnp.maximum(jnp.dot(h, raw[f"wh{i}"], precision=hp) + raw[f"bh{i}"], 0.0)
    return jnp.dot(h, raw["w_out"], precision=hp) + raw["b_out"]


def mlp_reference_mirrored(x, p):
    """Reference mirroring the kernel's bf16-at-the-MXU numerics (f32 accumulation)."""
    hp = jax.lax.Precision.HIGHEST
    f32 = jnp.float32
    h = jnp.dot(x.astype(jnp.bfloat16).astype(f32), p["w_in"].astype(f32), precision=hp)
    h = jnp.maximum(h + p["b_h"][0:1, :], 0.0)
    for l in range(HIDDEN_LAYERS):
        h = jnp.dot(h.astype(jnp.bfloat16).astype(f32), p["w_h"][l].astype(f32),
                    precision=hp)
        h = jnp.maximum(h + p["b_h"][l + 1:l + 2, :], 0.0)
    return jnp.dot(h, p["w_out"].T, precision=hp) + p["b_out"][0]


if __name__ == "__main__":
    key = jax.random.PRNGKey(0)
    k_params, k_x = jax.random.split(key)
    raw = init_params(k_params)
    params = pack_params(raw)
    x = jax.random.normal(k_x, (BATCH, INPUT_SIZE), jnp.float32)

    out = jax.block_until_ready(mlp_forward(x, params))
    assert out.shape == (BATCH, 1)

    # Tight check vs. a reference mirroring the kernel's bf16/f32 numerics.
    ref_mirror = mlp_reference_mirrored(x, params)
    assert jnp.allclose(out, ref_mirror, atol=2e-3, rtol=2e-3)

    # Loose check vs. pure-f32 PyTorch semantics (bf16 weight/input rounding
    # introduces ~0.1-1% relative error through 5 layers).
    ref_f32 = mlp_reference_f32(x, raw)
    assert jnp.allclose(out, ref_f32, atol=5e-2, rtol=5e-2)

    print("KERNEL_OK")
</pallas_src>

<mosaic_0001>
module attributes {stable_mosaic.version = 11 : i64} {
  func.func @mlp_kernel(%arg0: i32, %arg1: memref<8x500xf32, #tpu.memory_space<vmem>>, %arg2: memref<500x128xbf16, #tpu.memory_space<vmem>>, %arg3: memref<3x128x128xbf16, #tpu.memory_space<vmem>>, %arg4: memref<4x128xf32, #tpu.memory_space<vmem>>, %arg5: memref<1x128xf32, #tpu.memory_space<vmem>>, %arg6: memref<1xf32, #tpu.memory_space<smem>>, %arg7: memref<1x1x8xf32, #tpu.memory_space<vmem>>) attributes {dimension_semantics = [#tpu.dimension_semantics<parallel>], iteration_bounds = array<i64: 1>, scalar_prefetch = 0 : i64, scratch_operands = 0 : i64, tpu.core_type = #tpu.core_type<tc>, window_params = [{transform_indices = @transform_0, window_bounds = array<i64: 8, 500>}, {pipeline_mode = #tpu.pipeline_mode<synchronous>, transform_indices = @transform_1, window_bounds = array<i64: 500, 128>}, {pipeline_mode = #tpu.pipeline_mode<synchronous>, transform_indices = @transform_2, window_bounds = array<i64: 3, 128, 128>}, {pipeline_mode = #tpu.pipeline_mode<synchronous>, transform_indices = @transform_3, window_bounds = array<i64: 4, 128>}, {pipeline_mode = #tpu.pipeline_mode<synchronous>, transform_indices = @transform_4, window_bounds = array<i64: 1, 128>}, {transform_indices = @transform_5, window_bounds = array<i64: 1>}, {transform_indices = @transform_6, window_bounds = array<i64: 1, 1, 8>}]} {
    %c0 = arith.constant 0 : index
    %c0_0 = arith.constant 0 : index
    %0 = vector.load %arg1[%c0, %c0_0] : memref<8x500xf32, #tpu.memory_space<vmem>>, vector<8x500xf32>
    %1 = arith.truncf %0 : vector<8x500xf32> to vector<8x500xbf16>
    %c0_1 = arith.constant 0 : index
    %c0_2 = arith.constant 0 : index
    %2 = vector.load %arg2[%c0_1, %c0_2] : memref<500x128xbf16, #tpu.memory_space<vmem>>, vector<500x128xbf16>
    %cst = arith.constant dense<0.000000e+00> : vector<8x128xf32>
    %3 = tpu.matmul %1, %2, %cst {dimension_numbers = #tpu.dot_dimension_numbers<[1], [0], [0], [1], [0, 0, 1, 1], [], []>} : vector<8x500xbf16>, vector<500x128xbf16>, vector<8x128xf32> -> vector<8x128xf32>
    %c0_3 = arith.constant 0 : index
    %c0_4 = arith.constant 0 : index
    %4 = vector.load %arg4[%c0_3, %c0_4] : memref<4x128xf32, #tpu.memory_space<vmem>>, vector<1x128xf32>
    %5 = vector.broadcast %4 : vector<1x128xf32> to vector<8x128xf32>
    %6 = arith.addf %3, %5 : vector<8x128xf32>
    %cst_5 = arith.constant 0.000000e+00 : f32
    %7 = vector.broadcast %cst_5 : f32 to vector<8x128xf32>
    %8 = arith.maximumf %6, %7 : vector<8x128xf32>
    %9 = arith.truncf %8 : vector<8x128xf32> to vector<8x128xbf16>
    %c0_6 = arith.constant 0 : index
    %c0_7 = arith.constant 0 : index
    %c0_8 = arith.constant 0 : index
    %10 = vector.load %arg3[%c0_6, %c0_7, %c0_8] : memref<3x128x128xbf16, #tpu.memory_space<vmem>>, vector<1x128x128xbf16>
    %11 = vector.shape_cast %10 : vector<1x128x128xbf16> to vector<128x128xbf16>
    %cst_9 = arith.constant dense<0.000000e+00> : vector<8x128xf32>
    %12 = tpu.matmul %9, %11, %cst_9 {dimension_numbers = #tpu.dot_dimension_numbers<[1], [0], [0], [1], [0, 0, 1, 1], [], []>} : vector<8x128xbf16>, vector<128x128xbf16>, vector<8x128xf32> -> vector<8x128xf32>
    %c1 = arith.constant 1 : index
    %c0_10 = arith.constant 0 : index
    %13 = vector.load %arg4[%c1, %c0_10] : memref<4x128xf32, #tpu.memory_space<vmem>>, vector<1x128xf32>
    %14 = vector.broadcast %13 : vector<1x128xf32> to vector<8x128xf32>
    %15 = arith.addf %12, %14 : vector<8x128xf32>
    %cst_11 = arith.constant 0.000000e+00 : f32
    %16 = vector.broadcast %cst_11 : f32 to vector<8x128xf32>
    %17 = arith.maximumf %15, %16 : vector<8x128xf32>
    %18 = arith.truncf %17 : vector<8x128xf32> to vector<8x128xbf16>
    %c1_12 = arith.constant 1 : index
    %c0_13 = arith.constant 0 : index
    %c0_14 = arith.constant 0 : index
    %19 = vector.load %arg3[%c1_12, %c0_13, %c0_14] : memref<3x128x128xbf16, #tpu.memory_space<vmem>>, vector<1x128x128xbf16>
    %20 = vector.shape_cast %19 : vector<1x128x128xbf16> to vector<128x128xbf16>
    %cst_15 = arith.constant dense<0.000000e+00> : vector<8x128xf32>
    %21 = tpu.matmul %18, %20, %cst_15 {dimension_numbers = #tpu.dot_dimension_numbers<[1], [0], [0], [1], [0, 0, 1, 1], [], []>} : vector<8x128xbf16>, vector<128x128xbf16>, vector<8x128xf32> -> vector<8x128xf32>
    %c2 = arith.constant 2 : index
    %c0_16 = arith.constant 0 : index
    %22 = vector.load %arg4[%c2, %c0_16] : memref<4x128xf32, #tpu.memory_space<vmem>>, vector<1x128xf32>
    %23 = vector.broadcast %22 : vector<1x128xf32> to vector<8x128xf32>
    %24 = arith.addf %21, %23 : vector<8x128xf32>
    %cst_17 = arith.constant 0.000000e+00 : f32
    %25 = vector.broadcast %cst_17 : f32 to vector<8x128xf32>
    %26 = arith.maximumf %24, %25 : vector<8x128xf32>
    %27 = arith.truncf %26 : vector<8x128xf32> to vector<8x128xbf16>
    %c2_18 = arith.constant 2 : index
    %c0_19 = arith.constant 0 : index
    %c0_20 = arith.constant 0 : index
    %28 = vector.load %arg3[%c2_18, %c0_19, %c0_20] : memref<3x128x128xbf16, #tpu.memory_space<vmem>>, vector<1x128x128xbf16>
    %29 = vector.shape_cast %28 : vector<1x128x128xbf16> to vector<128x128xbf16>
    %cst_21 = arith.constant dense<0.000000e+00> : vector<8x128xf32>
    %30 = tpu.matmul %27, %29, %cst_21 {dimension_numbers = #tpu.dot_dimension_numbers<[1], [0], [0], [1], [0, 0, 1, 1], [], []>} : vector<8x128xbf16>, vector<128x128xbf16>, vector<8x128xf32> -> vector<8x128xf32>
    %c3 = arith.constant 3 : index
    %c0_22 = arith.constant 0 : index
    %31 = vector.load %arg4[%c3, %c0_22] : memref<4x128xf32, #tpu.memory_space<vmem>>, vector<1x128xf32>
    %32 = vector.broadcast %31 : vector<1x128xf32> to vector<8x128xf32>
    %33 = arith.addf %30, %32 : vector<8x128xf32>
    %cst_23 = arith.constant 0.000000e+00 : f32
    %34 = vector.broadcast %cst_23 : f32 to vector<8x128xf32>
    %35 = arith.maximumf %33, %34 : vector<8x128xf32>
    %c0_24 = arith.constant 0 : index
    %c0_25 = arith.constant 0 : index
    %36 = vector.load %arg5[%c0_24, %c0_25] : memref<1x128xf32, #tpu.memory_space<vmem>>, vector<1x128xf32>
    %37 = tpu.transpose %35, [1, 0] : vector<8x128xf32> -> vector<128x8xf32>
    %cst_26 = arith.constant dense<0.000000e+00> : vector<1x8xf32>
    %38 = tpu.matmul %36, %37, %cst_26 {dimension_numbers = #tpu.dot_dimension_numbers<[1], [0], [0], [1], [0, 0, 1, 1], [], []>} : vector<1x128xf32>, vector<128x8xf32>, vector<1x8xf32> -> vector<1x8xf32>
    %c0_27 = arith.constant 0 : index
    %39 = memref.load %arg6[%c0_27] : memref<1xf32, #tpu.memory_space<smem>>
    %40 = vector.broadcast %39 : f32 to vector<1x8xf32>
    %41 = arith.addf %38, %40 : vector<1x8xf32>
    %c0_28 = arith.constant 0 : index
    %c0_29 = arith.constant 0 : index
    %c0_30 = arith.constant 0 : index
    %42 = vector.load %arg7[%c0_28, %c0_29, %c0_30] : memref<1x1x8xf32, #tpu.memory_space<vmem>>, vector<1x1x8xf32>
    %43 = vector.shape_cast %42 : vector<1x1x8xf32> to vector<1x8xf32>
    %44 = vector.shape_cast %41 : vector<1x8xf32> to vector<1x1x8xf32>
    tpu.vector_store %arg7[%c0_28, %c0_29, %c0_30], %44 {strides = array<i32>} : memref<1x1x8xf32, #tpu.memory_space<vmem>>, vector<1x1x8xf32>,
    return
  }
  func.func @transform_0(%arg0: i32) -> (i32, i32) {
    %c0_i32 = arith.constant 0 : i32
    %c0_i32_0 = arith.constant 0 : i32
    return %arg0, %c0_i32 : i32, i32
  }
  func.func @transform_1(%arg0: i32) -> (i32, i32) {
    %c0_i32 = arith.constant 0 : i32
    %c0_i32_0 = arith.constant 0 : i32
    %c0_i32_1 = arith.constant 0 : i32
    return %c0_i32, %c0_i32_0 : i32, i32
  }
  func.func @transform_2(%arg0: i32) -> (i32, i32, i32) {
    %c0_i32 = arith.constant 0 : i32
    %c0_i32_0 = arith.constant 0 : i32
    %c0_i32_1 = arith.constant 0 : i32
    %c0_i32_2 = arith.constant 0 : i32
    return %c0_i32, %c0_i32_0, %c0_i32_1 : i32, i32, i32
  }
  func.func @transform_3(%arg0: i32) -> (i32, i32) {
    %c0_i32 = arith.constant 0 : i32
    %c0_i32_0 = arith.constant 0 : i32
    %c0_i32_1 = arith.constant 0 : i32
    return %c0_i32, %c0_i32_0 : i32, i32
  }
  func.func @transform_4(%arg0: i32) -> (i32, i32) {
    %c0_i32 = arith.constant 0 : i32
    %c0_i32_0 = arith.constant 0 : i32
    %c0_i32_1 = arith.constant 0 : i32
    return %c0_i32, %c0_i32_0 : i32, i32
  }
  func.func @transform_5(%arg0: i32) -> i32 {
    %c0_i32 = arith.constant 0 : i32
    %c0_i32_0 = arith.constant 0 : i32
    return %c0_i32 : i32
  }
  func.func @transform_6(%arg0: i32) -> (i32, i32, i32) {
    %c0_i32 = arith.constant 0 : i32
    %c0_i32_0 = arith.constant 0 : i32
    %c0_i32_1 = arith.constant 0 : i32
    return %arg0, %c0_i32, %c0_i32_0 : i32, i32, i32
  }
}

</mosaic_0001>

<bundles_post_ra>
// kernel: tpu_custom_call.1
= control target key start
LH: loop header
LB: loop body
LE: loop exit
PB: predicated region body
PF: predicated region fallthrough
CT: control target
= control target key end

     0   :  { %12 = vsyncpa [#allocation4], 0  ;;  %s1301_s0 = inlined_call_operand.hbm [shape: f32[8,500], index: 0, kind: input, shape index: {}]   ;;  %s1302_s1 = inlined_call_operand.hbm [shape: bf16[500,128], index: 1, kind: input, shape index: {}]   ;;  %s1303_s2 = inlined_call_operand.hbm [shape: bf16[3,128,128], index: 2, kind: input, shape index: {}]   ;;  %s1304_s3 = inlined_call_operand.vmem [shape: f32[4,128], index: 3, kind: input, shape index: {}]   ;;  %s1305_s4 = inlined_call_operand.vmem [shape: f32[1,128], index: 4, kind: input, shape index: {}]   ;;  %s1306_s5 = inlined_call_operand.<no memory space> [shape: f32[1], index: 5, kind: input, shape index: {}]   ;;  %s1307_s6 = inlined_call_operand.hbm [shape: f32[1,1,8], index: 6, kind: output, shape index: {}]  }
   0x1   :  { %13 = vsyncpa [#allocation7], 0 }
   0x2   :  { %14 = vsyncpa [#allocation5], 0  ;;  %s1195_s21 = smov [#allocation6]  }
   0x3   :  { %s30_s22 = sshll.u32 %s1195_s21, 4  ;;  %s31_s22 = int_to_ptr.vmem [resolvable:$true] %s30_s22 }
   0x4   :  { %s1117_s23 = scalar_lea.vmem %s31_s22, 4032  ;;  %p1122_p1 = scmp.lt.s32.totalorder %s31_s22, %s31_s22 }
   0x5   :  { %p1118_p0 = scmp.ne.s32.totalorder %s31_s22, %s1117_s23  ;;  %p1123_p2 = scmp.lt.s32.totalorder %s1117_s23, %s1117_s23 }
   0x7   :  { %p1124_p3 = por %p1123_p2, %p1122_p1 }
   0x9   :  { %p1125_p4 = pnand %p1124_p3, %p1118_p0 }
   0xb   :  { %1128 = shalt.err (!%p1125_p4)
}
   0xc   :  { %s1196_s24 = smov 64   ;;  %s1197_s25 = smov 4  }
   0xd   :  { %36 = dma.hbm_to_vmem [thread:$0]  %s1302_s1, 4032, %s31_s22, [#allocation7], %s1196_s24, %s1196_s24, %s1197_s25  }
   0xe   :  { %s1198_s28 = smov [#allocation3]   ;;  %s1199_s30 = smov [#allocation8]  }
   0xf   :  { %s21_s29 = sshll.u32 %s1198_s28, 4  ;;  %s42_s7 = sshll.u32 %s1199_s30, 4  ;;  %s22_s29 = int_to_ptr.vmem [resolvable:$true] %s21_s29  ;;  %s43_s7 = int_to_ptr.vmem [resolvable:$true] %s42_s7 }
  0x10   :  { %s1137_s8 = scalar_lea.vmem %s22_s29, 512  ;;  %p1142_p6 = scmp.lt.s32.totalorder %s22_s29, %s22_s29 }
  0x11   :  { %p1138_p5 = scmp.ne.s32.totalorder %s22_s29, %s1137_s8  ;;  %p1143_p7 = scmp.lt.s32.totalorder %s1137_s8, %s1137_s8 }
  0x13   :  { %p1144_p8 = por %p1143_p7, %p1142_p6 }
  0x15   :  { %p1145_p9 = pnand %p1144_p8, %p1138_p5 }
  0x17   :  { %1148 = shalt.err (!%p1145_p9)
}
  0x18   :  { %24 = dma.hbm_to_vmem [thread:$0]  %s1301_s0, 512, %s22_s29, [#allocation4]  }
  0x19   :  { %s1157_s11 = scalar_lea.vmem %s43_s7, 3072  ;;  %p1162_p11 = scmp.lt.s32.totalorder %s43_s7, %s43_s7 }
  0x1a   :  { %p1158_p10 = scmp.ne.s32.totalorder %s43_s7, %s1157_s11  ;;  %p1163_p12 = scmp.lt.s32.totalorder %s1157_s11, %s1157_s11 }
  0x1c   :  { %p1164_p13 = por %p1163_p12, %p1162_p11 }
  0x1e   :  { %p1165_p0 = pnand %p1164_p13, %p1158_p10 }
  0x20   :  { %1168 = shalt.err (!%p1165_p0)
}
  0x21   :  { %48 = dma.hbm_to_vmem [thread:$0]  %s1303_s2, 3072, %s43_s7, [#allocation7], %s1196_s24, %s1196_s24, %s1197_s25  }
  0x22   :  { %1189 = dma.done.wait [#allocation4], 512  }
  0x23   :  { %1190 = vsyncadd [#allocation4], 4294966784 }
  0x24   :  { %1191 = dma.done.wait [#allocation7], 7104  }
  0x25   :  { %1192 = vsyncadd [#allocation7], 4294960192  ;;  %v1053_v0 = vld [vmem:[#allocation6 + $0x78] sm:$0xff]   ;;  %vm334_vm0 = vcmask 1041408   ;;  %v1057_v4 = vld [vmem:[#allocation6 + $0x70] sm:$0xff]   ;;  %vm330_vm1 = vcmask 949248  }
  0x26   :  { %v1054_v1 = vld [vmem:[#allocation6 + $0xf8] ss:$0 sps:$4 sm:$0x33]   ;;  %906 = vmatprep.subr.bf16.mxu0 %v1053_v0  ;;  %v1058_v5 = vld [vmem:[#allocation6 + $0xf0] sm:$0xff]   ;;  %v1061_v8 = vld [vmem:[#allocation6 + $0x68] sm:$0xff]   ;;  %v1200_v40 = vmov 0.0  }
  0x27   :  { %v1055_v2 = vld [vmem:[#allocation6 + $0x38] sm:$0xff]   ;;  %1044 = vmatprep.subr.msk.bf16.mxu1 %vm334_vm0, %v1054_v1  ;;  %v1059_v6 = vld [vmem:[#allocation6 + $0x30] sm:$0xff]   ;;  %v1062_v9 = vld [vmem:[#allocation6 + $0xe8] sm:$0xff]   ;;  %vm1201_vm2 = vmmov 0   ;;  %s1202_s23 = smov [#allocation9]   ;;  %vm827_vm3 = vcmask 57344  }
  0x28   :  { %907 = vmatpush3.bf16.msra.mxu0 %v1055_v2  ;;  %v1056_v3 = vld [vmem:[#allocation6 + $0xb8] sm:$0xff]   ;;  %v1060_v7 = vld [vmem:[#allocation6 + $0xb0] sm:$0xff]   ;;  %v1063_v10 = vld [vmem:[#allocation6 + $0x28] sm:$0xff]   ;;  %s835_s24 = sshll.u32 %s1202_s23, 4  ;;  %s836_s24 = int_to_ptr.vmem [resolvable:$true] %s835_s24 }
  0x29   :  { %929 = vmatpush3.bf16.msra.mxu1 %v1056_v3  ;;  %908 = vmatprep.subr.bf16.mxu0 %v1057_v4  ;;  %v1064_v11 = vld [vmem:[#allocation6 + $0xa8] sm:$0xff]   ;;  %v1065_v12 = vld [vmem:[#allocation6 + $0x60] sm:$0xff]   ;;  %v1069_v16 = vld [vmem:[#allocation6 + $0x58] sm:$0xff]   ;;  %s1173_s25 = scalar_lea.vmem %s836_s24, 32  ;;  %p1174_p2 = scmp.lt.s32.totalorder %s836_s24, %s836_s24 }
  0x2a   :  { %930 = vmatprep.subr.bf16.mxu1 %v1058_v5  ;;  %v1066_v13 = vld [vmem:[#allocation6 + $0xe0] sm:$0xff]   ;;  %v1070_v17 = vld [vmem:[#allocation6 + $0xd8] sm:$0xff]   ;;  %v1073_v20 = vld [vmem:[#allocation6 + $0x50] sm:$0xff]  }
  0x2b   :  { %v1067_v14 = vld [vmem:[#allocation6 + $0x20] sm:$0xff]   ;;  %v1071_v18 = vld [vmem:[#allocation6 + $0x18] sm:$0xff]   ;;  %v1074_v21 = vld [vmem:[#allocation6 + $0xd0] sm:$0xff]  }
  0x2c   :  { %909 = vmatpush3.bf16.msra.mxu0 %v1059_v6  ;;  %v1068_v15 = vld [vmem:[#allocation6 + $0xa0] sm:$0xff]   ;;  %v1072_v19 = vld [vmem:[#allocation6 + $0x98] sm:$0xff]   ;;  %v1075_v22 = vld [vmem:[#allocation6 + $0x10] sm:$0xff]  }
  0x2d   :  { %931 = vmatpush3.bf16.msra.mxu1 %v1060_v7  ;;  %910 = vmatprep.subr.bf16.mxu0 %v1061_v8  ;;  %v1076_v23 = vld [vmem:[#allocation6 + $0x90] sm:$0xff]   ;;  %v1077_v24 = vld [vmem:[#allocation6 + $0x48] sm:$0xff]   ;;  %v1081_v28 = vld [vmem:[#allocation6 + $0x40] sm:$0xff]  }
  0x2e   :  { %932 = vmatprep.subr.bf16.mxu1 %v1062_v9  ;;  %v1078_v25 = vld [vmem:[#allocation6 + $0xc8] sm:$0xff]   ;;  %v1082_v29 = vld [vmem:[#allocation6 + $0xc0] sm:$0xff]   ;;  %v68_v34 = vld [vmem:[#allocation3 + $0x18] sm:$0xff] }
  0x2f   :  { %v1079_v26 = vld [vmem:[#allocation6 + $0x8] sm:$0xff]   ;;  %v1083_v30 = vld [vmem:[#allocation6] sm:$0xff]   ;;  %v67_v36 = vld [vmem:[#allocation3 + $0x10] sm:$0xff]  ;;  %v72_v37 = vpack.c.bf16 %v68_v34, %v68_v34 }
  0x30   :  { %911 = vmatpush3.bf16.msra.mxu0 %v1063_v10  ;;  %v1080_v27 = vld [vmem:[#allocation6 + $0x88] sm:$0xff]   ;;  %v1084_v31 = vld [vmem:[#allocation6 + $0x80] sm:$0xff]   ;;  %v71_v39 = vpack.c.bf16 %v67_v36, %v67_v36  ;;  %v1085_v41 = vld [vmem:[#allocation8 + $0x38] sm:$0xff]  }
  0x31   :  { %933 = vmatpush3.bf16.msra.mxu1 %v1064_v11  ;;  %912 = vmatprep.subr.bf16.mxu0 %v1065_v12  ;;  %v66_v32 = vld [vmem:[#allocation3 + $0x8] sm:$0xff]  ;;  %v65_v35 = vld [vmem:[#allocation3] sm:$0xff]  ;;  %v1089_v45 = vld [vmem:[#allocation8 + $0x18] sm:$0xff]  }
  0x32   :  { %934 = vmatprep.subr.bf16.mxu1 %v1066_v13  ;;  %v70_v33 = vpack.c.bf16 %v66_v32, %v66_v32  ;;  %v69_v38 = vpack.c.bf16 %v65_v35, %v65_v35  ;;  %878 = vmatprep.mubr.msk.bf16.mxu1 %vm330_vm1, %v72_v37  ;;  %v1086_v42 = vld [vmem:[#allocation8 + $0x30] sm:$0xff]   ;;  %v1087_v43 = vld [vmem:[#allocation8 + $0x28] sm:$0xff]   ;;  %v1088_v44 = vld [vmem:[#allocation8 + $0x20] sm:$0xff]  }
  0x33   :  { %v1090_v46 = vld [vmem:[#allocation8 + $0x10] sm:$0xff]   ;;  %v1091_v47 = vld [vmem:[#allocation8 + $0x8] sm:$0xff]   ;;  %v1092_v48 = vld [vmem:[#allocation8] sm:$0xff]  }
  0x34   :  { %913 = vmatpush3.bf16.msra.mxu0 %v1067_v14  ;;  %370 = vmatprep.mubr.bf16.mxu0 %v70_v33  ;;  %v1093_v49 = vld [vmem:[#allocation8 + $0x78] sm:$0xff]   ;;  %v1094_v50 = vld [vmem:[#allocation8 + $0x70] sm:$0xff]   ;;  %v1095_v51 = vld [vmem:[#allocation8 + $0x68] sm:$0xff]  }
  0x35   :  { %935 = vmatpush3.bf16.msra.mxu1 %v1068_v15  ;;  %914 = vmatprep.subr.bf16.mxu0 %v1069_v16  ;;  %v1096_v52 = vld [vmem:[#allocation8 + $0x60] sm:$0xff]   ;;  %v1097_v53 = vld [vmem:[#allocation8 + $0x58] sm:$0xff]   ;;  %v1098_v54 = vld [vmem:[#allocation8 + $0x50] sm:$0xff]  }
  0x36   :  { %936 = vmatprep.subr.bf16.mxu1 %v1070_v17  ;;  %v845_v57 = vld [vmem:[%s1304_s3] ss:$0 sm:$0xff]  ;;  %v1099_v6 = vld [vmem:[#allocation8 + $0x48] sm:$0xff]   ;;  %v1101_v8 = vld [vmem:[#allocation8 + $0xb8] sm:$0xff]  }
  0x37   :  { %v1100_v7 = vld [vmem:[#allocation8 + $0x40] sm:$0xff]   ;;  %v1102_v9 = vld [vmem:[#allocation8 + $0xb0] sm:$0xff]   ;;  %v1103_v10 = vld [vmem:[#allocation8 + $0xa8] sm:$0xff]  }
  0x38   :  { %915 = vmatpush3.bf16.msra.mxu0 %v1071_v18  ;;  %v1104_v11 = vld [vmem:[#allocation8 + $0xa0] sm:$0xff]   ;;  %v1105_v12 = vld [vmem:[#allocation8 + $0x98] sm:$0xff]   ;;  %v1106_v13 = vld [vmem:[#allocation8 + $0x90] sm:$0xff]  }
  0x39   :  { %937 = vmatpush3.bf16.msra.mxu1 %v1072_v19  ;;  %916 = vmatprep.subr.bf16.mxu0 %v1073_v20  ;;  %v879_v14 = vld [vmem:[%s1304_s3 + $0x1] ss:$0 sm:$0xff]  ;;  %v897_v32 = vld [vmem:[%s1304_s3 + $0x3] ss:$0 sm:$0xff] }
  0x3a   :  { %938 = vmatprep.subr.bf16.mxu1 %v1074_v21 }
  0x3c   :  { %917 = vmatpush3.bf16.msra.mxu0 %v1075_v22  ;;  %v1107_v22 = vld [vmem:[#allocation8 + $0x88] sm:$0xff]  }
  0x3d   :  { %939 = vmatpush3.bf16.msra.mxu1 %v1076_v23  ;;  %918 = vmatprep.subr.bf16.mxu0 %v1077_v24  ;;  %v1108_v23 = vld [vmem:[#allocation8 + $0x80] sm:$0xff]  }
  0x3e   :  { %940 = vmatprep.subr.bf16.mxu1 %v1078_v25  ;;  %v888_v24 = vld [vmem:[%s1304_s3 + $0x2] ss:$0 sm:$0xff]  ;;  %s1169_s3 = scalar_lea.vmem %s836_s24, 16 }
  0x3f   :  { %p1170_p1 = scmp.ne.s32.totalorder %s836_s24, %s1169_s3  ;;  %p1175_p3 = scmp.lt.s32.totalorder %s1173_s25, %s1169_s3 }
  0x40   :  { %919 = vmatpush3.bf16.msra.mxu0 %v1079_v26 }
  0x41   :  { %941 = vmatpush3.bf16.msra.mxu1 %v1080_v27  ;;  %920 = vmatprep.subr.bf16.mxu0 %v1081_v28  ;;  %p1176_p4 = por %p1175_p3, %p1174_p2 }
  0x42   :  { %942 = vmatprep.subr.bf16.mxu1 %v1082_v29 }
  0x43   :  { %p1177_p5 = pnand %p1176_p4, %p1170_p1 }
  0x44   :  { %921 = vmatpush3.bf16.msra.mxu0 %v1083_v30 }
  0x45   :  { %943 = vmatpush3.bf16.msra.mxu1 %v1084_v31  ;;  %979 = vmatprep.subr.bf16.mxu0 %v1200_v40 }
  0x46   :  { %999 = vmatprep.subr.bf16.mxu1 %v1200_v40 }
  0x47   :  { %371 = vmatmul.mubr.bf16.vlgmr.msra.gmra.mxu0 %v69_v38  ;;  %v754_v38 = vld [vmem:[%s1305_s4] sm:$0x1] }
  0x48   :  { %411 = vmatmul.mubr.bf16.vlgmr.msra.gmra.mxu1 %v71_v39  ;;  %980 = vmatpush3.bf16.msra.mxu0 %v1085_v41 }
  0x49   :  { %981 = vmatprep.subr.bf16.mxu0 %v1200_v40  ;;  %995 = vmatprep.mubr.msk.bf16.mxu0 %vm1201_vm2, %v1200_v40 }
  0x4a   :  { %1015 = vmatprep.mubr.msk.bf16.mxu1 %vm1201_vm2, %v1200_v40  ;;  %1000 = vmatpush3.bf16.msra.mxu1 %v1093_v49 }
  0x4b   :  { %1001 = vmatprep.subr.bf16.mxu1 %v1200_v40 }
  0x4c   :  { %982 = vmatpush3.bf16.msra.mxu0 %v1086_v42 }
  0x4d   :  { %983 = vmatprep.subr.bf16.mxu0 %v1200_v40 }
  0x4e   :  { %1002 = vmatpush3.bf16.msra.mxu1 %v1094_v50 }
  0x4f   :  { %1003 = vmatprep.subr.bf16.mxu1 %v1200_v40 }
  0x50   :  { %984 = vmatpush3.bf16.msra.mxu0 %v1087_v43 }
  0x51   :  { %985 = vmatprep.subr.bf16.mxu0 %v1200_v40 }
  0x52   :  { %1004 = vmatpush3.bf16.msra.mxu1 %v1095_v51 }
  0x53   :  { %1005 = vmatprep.subr.bf16.mxu1 %v1200_v40 }
  0x54   :  { %986 = vmatpush3.bf16.msra.mxu0 %v1088_v44 }
  0x55   :  { %987 = vmatprep.subr.bf16.mxu0 %v1200_v40 }
  0x56   :  { %1006 = vmatpush3.bf16.msra.mxu1 %v1096_v52 }
  0x57   :  { %1007 = vmatprep.subr.bf16.mxu1 %v1200_v40 }
  0x58   :  { %988 = vmatpush3.bf16.msra.mxu0 %v1089_v45 }
  0x59   :  { %989 = vmatprep.subr.bf16.mxu0 %v1200_v40 }
  0x5a   :  { %1008 = vmatpush3.bf16.msra.mxu1 %v1097_v53 }
  0x5b   :  { %1009 = vmatprep.subr.bf16.mxu1 %v1200_v40 }
  0x5c   :  { %990 = vmatpush3.bf16.msra.mxu0 %v1090_v46 }
  0x5d   :  { %991 = vmatprep.subr.bf16.mxu0 %v1200_v40 }
  0x5e   :  { %1010 = vmatpush3.bf16.msra.mxu1 %v1098_v54 }
  0x5f   :  { %1011 = vmatprep.subr.bf16.mxu1 %v1200_v40 }
  0x60   :  { %992 = vmatpush3.bf16.msra.mxu0 %v1091_v47 }
  0x61   :  { %993 = vmatprep.subr.bf16.mxu0 %v1200_v40 }
  0x62   :  { %1012 = vmatpush3.bf16.msra.mxu1 %v1099_v6 }
  0x63   :  { %1013 = vmatprep.subr.bf16.mxu1 %v1200_v40 }
  0x64   :  { %994 = vmatpush3.bf16.msra.mxu0 %v1092_v48 }
  0x65   :  { %1019 = vmatprep.subr.bf16.mxu0 %v1200_v40 }
  0x66   :  { %1014 = vmatpush3.bf16.msra.mxu1 %v1100_v7 }
  0x67   :  { %1039 = vmatprep.subr.mxu1 %v1200_v40 }
 0x107   :  { %v922_v55 = vpop.f32.mrf.mxu0 }
 0x108   :  { %v944_v56 = vpop.f32.mrf.mxu1 }
 0x109   :  { %v923_v58 = vpop.f32.mrf.mxu0 }
 0x10a   :  { %v924_v59 = vadd.f32 %v923_v58, %v922_v55  ;;  %v945_v60 = vpop.f32.mrf.mxu1 }
 0x10b   :  { %v925_v61 = vpop.f32.mrf.mxu0  ;;  %v946_v63 = vadd.f32 %v945_v60, %v944_v56 }
 0x10c   :  { %v373_v62 = vadd.f32 %v924_v59, %v845_v57  ;;  %v947_v0 = vpop.f32.mrf.mxu1 }
 0x10d   :  { %v926_v1 = vpop.f32.mrf.mxu0 }
 0x10e   :  { %v413_v2 = vadd.f32 %v946_v63, %v373_v62  ;;  %v948_v3 = vpop.f32.mrf.mxu1 }
 0x110   :  { %v418_v4 = vmax.f32 %v413_v2, 0.0 }
 0x112   :  { %v419_v5 = vpack.c.bf16 %v418_v4, %v418_v4 }
 0x114   :  { %996 = vmatmul.mubr.bf16.vlgmr.msra.gmra.mxu0 %v419_v5 }
 0x115   :  { %1035 = vmatprep.mubr.msk.bf16.mxu0 %vm1201_vm2, %v1200_v40  ;;  %1020 = vmatpush3.bf16.msra.mxu0 %v1101_v8 }
 0x116   :  { %1021 = vmatprep.subr.bf16.mxu0 %v1200_v40 }
 0x119   :  { %1022 = vmatpush3.bf16.msra.mxu0 %v1102_v9 }
 0x11a   :  { %1023 = vmatprep.subr.bf16.mxu0 %v1200_v40 }
 0x11d   :  { %1024 = vmatpush3.bf16.msra.mxu0 %v1103_v10 }
 0x11e   :  { %1025 = vmatprep.subr.bf16.mxu0 %v1200_v40 }
 0x121   :  { %1026 = vmatpush3.bf16.msra.mxu0 %v1104_v11 }
 0x122   :  { %1027 = vmatprep.subr.bf16.mxu0 %v1200_v40 }
 0x125   :  { %1028 = vmatpush3.bf16.msra.mxu0 %v1105_v12 }
 0x126   :  { %1029 = vmatprep.subr.bf16.mxu0 %v1200_v40 }
 0x129   :  { %1030 = vmatpush3.bf16.msra.mxu0 %v1106_v13 }
 0x12a   :  { %1031 = vmatprep.subr.bf16.mxu0 %v1200_v40 }
 0x12d   :  { %1032 = vmatpush3.bf16.msra.mxu0 %v1107_v22 }
 0x12e   :  { %1033 = vmatprep.subr.bf16.mxu0 %v1200_v40 }
 0x131   :  { %1034 = vmatpush3.bf16.msra.mxu0 %v1108_v23 }
 0x1d4   :  { %v523_v15 = vpop.f32.mrf.mxu0 }
 0x1d5   :  { %v524_v16 = vadd.f32 %v879_v14, %v523_v15 }
 0x1d6   :  { %v997_v17 = vpop.f32.mrf.mxu0 }
 0x1d7   :  { %v529_v18 = vmax.f32 %v524_v16, 0.0 }
 0x1d8   :  { %v526_v19 = vpop.f32.mrf.mxu0 }
 0x1d9   :  { %v530_v20 = vpack.c.bf16 %v529_v18, %v529_v18 }
 0x1da   :  { %v998_v21 = vpop.f32.mrf.mxu0 }
 0x1db   :  { %1016 = vmatmul.mubr.bf16.vlgmr.msra.gmra.mxu1 %v530_v20 }
 0x1dc   :  { %1041 = vmatprep.mubr.msk.f32.mxu1 %vm1201_vm2, %v1200_v40  ;;  %v756_v40 = vstv %s1306_s5 }
 0x29b   :  { %v635_v25 = vpop.f32.mrf.mxu1 }
 0x29c   :  { %v636_v26 = vadd.f32 %v888_v24, %v635_v25 }
 0x29d   :  { %v1017_v27 = vpop.f32.mrf.mxu1 }
 0x29e   :  { %v641_v28 = vmax.f32 %v636_v26, 0.0 }
 0x29f   :  { %v638_v29 = vpop.f32.mrf.mxu1 }
 0x2a0   :  { %v642_v30 = vpack.c.bf16 %v641_v28, %v641_v28 }
 0x2a1   :  { %v1018_v31 = vpop.f32.mrf.mxu1 }
 0x2a2   :  { %1036 = vmatmul.mubr.bf16.vlgmr.msra.gmra.mxu0 %v642_v30 }
 0x362   :  { %v747_v33 = vpop.f32.mrf.mxu0 }
 0x363   :  { %v748_v34 = vadd.f32 %v897_v32, %v747_v33 }
 0x364   :  { %v1037_v35 = vpop.f32.mrf.mxu0 }
 0x365   :  { %v753_v36 = vmax.f32 %v748_v34, 0.0 }
 0x366   :  { %v750_v37 = vpop.f32.mrf.mxu0 }
 0x367   :  { %1040 = vmatpush3.xpose.msra.mxu1 %v753_v36 }
 0x368   :  { %v1038_v39 = vpop.f32.mrf.mxu0 }
 0x36a   :  { %1042 = vmatmul.mubr.f32.vlgmr.msra.gmra.mxu1 %v754_v38 }
 0x42a   :  { %v823_v41 = vpop.f32.mrf.mxu1 }
 0x42b   :  { %v824_v42 = vadd.f32 %v823_v41, %v756_v40 }
 0x42c   :  { %v1043_v43 = vpop.f32.mrf.mxu1 }
 0x42d   :  { %828 = vst.msk [vmem:[#allocation9] sm:$0x1] %vm827_vm3, %v824_v42 }
 0x42e   :  { %1180 = shalt.err (!%p1177_p5)
}
 0x42f   :  { %838 = dma.vmem_to_hbm [thread:$0]  %s836_s24, 16, %s1307_s6, [#allocation5]  }
 0x430   :  { %1193 = dma.done.wait [#allocation5], 16  }
 0x431   :  { %1194 = vsyncadd [#allocation5], 4294967280 }
 0x432   :  { %842 = vsyncpa [#allocation4], 1 }
 0x433   :  { %843 = vsyncpa [#allocation7], 1 }
 0x434   :  { %844 = vsyncpa [#allocation5], 1 }

</bundles_post_ra>
